<compile_context>
chip_gen: v6e
topology: v6e:2x2x1
jax: 0.10.0
libtpu: 0.0.40
codegen_flags: <defaults>
</compile_context>

<pallas_src>
import functools

import jax
import jax.numpy as jnp
from jax.experimental import pallas as pl
from jax.experimental.pallas import tpu as pltpu


LANE = 128
SUBLANE_BF16 = 16     # bf16 sublane packing multiple
TM_MAX = 1024


def _round_up(x, m):
    return (x + m - 1) // m * m


# ----------------------------------------------------------------------------
# Pallas kernel: o = x @ w + onehot(pos_idx) @ pos_tab
#   x       : (tm, 768)      bf16  CLS hidden-state row tile
#   w       : (768, E_pad)   bf16  pre-composed W1@W2, zero-padded to 128 lanes
#   pos_tab : (P_pad, E_pad) f32   position embedding + composed bias, padded
#   pos_idx : (tm, 1)        int32 per-row position index (4 B/row stream)
#   o       : (tm, E_pad)    bf16  lane-dense, unmasked stores
# ----------------------------------------------------------------------------
def matmul_posadd_kernel(x_ref, w_ref, pos_ref, idx_ref, o_ref):
    acc = jnp.dot(x_ref[...], w_ref[...], preferred_element_type=jnp.float32)
    tm = x_ref.shape[0]
    p_pad = pos_ref.shape[0]
    lanes = jax.lax.broadcasted_iota(jnp.int32, (tm, p_pad), 1)
    onehot = (idx_ref[...] == lanes).astype(jnp.float32)          # (tm, P_pad)
    acc = acc + jnp.dot(onehot, pos_ref[...],
                        preferred_element_type=jnp.float32)
    o_ref[...] = acc.astype(o_ref.dtype)


def matmul_posadd(x2d, w, pos_tab, pos_idx, *, tm):
    """x2d: (M16, K) bf16; w: (K, E_pad) bf16; pos_tab: (P_pad, E_pad) f32;
    pos_idx: (M16, 1) int32. Returns (M16, E_pad) bf16."""
    M16, K = x2d.shape
    E_pad = w.shape[1]
    P_pad = pos_tab.shape[0]
    grid_m = pl.cdiv(M16, tm)   # ragged last tile allowed

    return pl.pallas_call(
        matmul_posadd_kernel,
        out_shape=jax.ShapeDtypeStruct((M16, E_pad), jnp.bfloat16),
        grid_spec=pltpu.PrefetchScalarGridSpec(
            num_scalar_prefetch=0,
            grid=(grid_m,),
            in_specs=[
                pl.BlockSpec((tm, K), lambda i: (i, 0)),
                # constant index_map -> weights fetched once, VMEM-resident
                pl.BlockSpec((K, E_pad), lambda i: (0, 0)),
                pl.BlockSpec((P_pad, E_pad), lambda i: (0, 0)),
                pl.BlockSpec((tm, 1), lambda i: (i, 0)),
            ],
            out_specs=pl.BlockSpec((tm, E_pad), lambda i: (i, 0)),
        ),
        compiler_params=pltpu.CompilerParams(
            dimension_semantics=("parallel",),
            vmem_limit_bytes=32 * 1024 * 1024,  # guardrail for v7x (64 MiB VMEM)
        ),
    )(x2d, w, pos_tab, pos_idx)


# ----------------------------------------------------------------------------
# Parameter construction (deterministic, synthetic)
# ----------------------------------------------------------------------------
def init_params(key, *, embed_size, num_labels, max_par_len, vocab_size,
                bert_hidden=768):
    ks = jax.random.split(key, 12)

    def lin(kw, kb, fan_in, fan_out):
        bound = 1.0 / jnp.sqrt(fan_in)
        # stored (fan_in, fan_out), i.e. already transposed vs. torch weight
        w = jax.random.uniform(kw, (fan_in, fan_out), jnp.float32, -bound, bound)
        b = jax.random.uniform(kb, (1, fan_out), jnp.float32, -bound, bound)
        return w, b

    p = {}
    p["fc1_w"], p["fc1_b"] = lin(ks[0], ks[1], bert_hidden, 3 * embed_size)
    p["fcp1_w"], p["fcp1_b"] = lin(ks[2], ks[3], bert_hidden, 3 * embed_size)
    p["fc2_w"], p["fc2_b"] = lin(ks[4], ks[5], 3 * embed_size, embed_size)
    p["fcp2_w"], p["fcp2_b"] = lin(ks[6], ks[7], 3 * embed_size, embed_size)
    p["word_embedding"] = jax.random.normal(ks[8], (num_labels, embed_size),
                                            jnp.float32)
    p["position_embedding"] = jax.random.normal(ks[9], (max_par_len, embed_size),
                                                jnp.float32)
    # Deterministic stand-in for the frozen pretrained BERT encoder.
    p["bert_tok_table"] = 0.02 * jax.random.normal(ks[10],
                                                   (vocab_size, bert_hidden),
                                                   jnp.float32)
    bound = 1.0 / jnp.sqrt(bert_hidden)
    p["bert_pool_w"] = jax.random.uniform(ks[11], (bert_hidden, bert_hidden),
                                          jnp.float32, -bound, bound)
    p["bert_pool_b"] = jnp.zeros((bert_hidden,), jnp.float32)
    return p


def prepare_params(params, *, embed_size):
    """One-off (per parameter set) preprocessing, hoisted out of the forward:
    compose reshape_fc1->reshape_fc2, fold the bias into the position table,
    pad to 128 lanes, and cast the matmul operands / token table to bf16."""
    E = embed_size
    E_pad = _round_up(E, LANE)

    # reshape_fc1 -> reshape_fc2 have no nonlinearity between them:
    #   W_eff = W1 @ W2, b_eff = b1 @ W2 + b2
    w_eff = params["fc1_w"] @ params["fc2_w"]                      # (768, E)
    b_eff = params["fc1_b"] @ params["fc2_w"] + params["fc2_b"]    # (1, E)

    pos_bias = params["position_embedding"] + b_eff                # (maxP, E)
    max_par_len = pos_bias.shape[0]
    P_pad = _round_up(max_par_len, 8)

    return {
        "w_pad": jnp.pad(w_eff, ((0, 0), (0, E_pad - E))).astype(jnp.bfloat16),
        "pos_bias_pad": jnp.pad(pos_bias,
                                ((0, P_pad - max_par_len), (0, E_pad - E))),
        "tok_table_bf16": params["bert_tok_table"].astype(jnp.bfloat16),
        "word_embedding": params["word_embedding"],
    }


# ----------------------------------------------------------------------------
# Forward pass
# ----------------------------------------------------------------------------
@functools.partial(jax.jit, static_argnames=("embed_size",))
def sentence_encoder_forward(prepped, x, mask, *, embed_size):
    N, par_len, seq_len = x.shape
    M = N * par_len
    E = embed_size

    # --- frozen "BERT" word-level encoder (synthetic stand-in, plain JAX) ----
    # Only the CLS hidden state feeds the surviving output path, so only the
    # N*P CLS rows are materialized, directly in bf16 (gather+mask fuse).
    cls_ids = x[:, :, 0].reshape(M)
    cls_msk = mask[:, :, 0].reshape(M, 1).astype(jnp.bfloat16)
    cls_hidden = prepped["tok_table_bf16"][cls_ids] * cls_msk       # (M,768) bf16

    # --- row padding to the bf16 sublane multiple only (ragged grid) ---------
    M16 = _round_up(M, SUBLANE_BF16)
    x_p = jnp.pad(cls_hidden, ((0, M16 - M), (0, 0)))               # <=15 rows

    # per-row position index (4 B/row), replaces the old (M, E_pad) f32 stream
    pos_idx = jnp.broadcast_to(
        jnp.arange(par_len, dtype=jnp.int32)[None, :], (N, par_len)
    ).reshape(M, 1)
    pos_idx = jnp.pad(pos_idx, ((0, M16 - M), (0, 0)))

    # --- row-tile selection: big tiles, but >=2 grid steps when possible -----
    tm = min(TM_MAX, max(SUBLANE_BF16,
                         _round_up((M16 + 1) // 2, SUBLANE_BF16)))

    out_p = matmul_posadd(x_p, prepped["w_pad"], prepped["pos_bias_pad"],
                          pos_idx, tm=tm)                           # (M16, E_pad) bf16

    out = out_p[:M, :E].astype(jnp.float32).reshape(N, par_len, E)
    # nn.Dropout in eval mode == identity.

    # pooled_output (reshape_fc_pool1/2) is computed but never consumed in the
    # reference forward -> dead code, dropped.
    # TODO(synk): LabelAttTransformerBlock / EncoderTransformerBlock are not
    #             defined in the reference source -> identity; label_embed and
    #             the sentence-level mask are therefore unused.
    return out


# ----------------------------------------------------------------------------
if __name__ == "__main__":
    EMBED_SIZE = 32
    N, PAR_LEN, SEQ_LEN = 5, 9, 8        # exercises grid_m=2 + ragged last tile
    LABELS = ["background", "objective", "method", "result", "conclusion"]
    MAX_PAR_LEN = 16
    VOCAB = 128

    key = jax.random.PRNGKey(0)
    k_par, k_x, k_m = jax.random.split(key, 3)

    params = init_params(k_par, embed_size=EMBED_SIZE, num_labels=len(LABELS),
                         max_par_len=MAX_PAR_LEN, vocab_size=VOCAB)
    prepped = prepare_params(params, embed_size=EMBED_SIZE)

    x = jax.random.randint(k_x, (N, PAR_LEN, SEQ_LEN), 0, VOCAB, jnp.int32)
    mask = (jax.random.uniform(k_m, (N, PAR_LEN, SEQ_LEN)) > 0.2).astype(jnp.int32)
    mask = mask.at[:, :, 0].set(1)  # CLS always attended

    out = sentence_encoder_forward(prepped, x, mask, embed_size=EMBED_SIZE)
    jax.block_until_ready(out)
    assert out.shape == (N, PAR_LEN, EMBED_SIZE), out.shape
    assert out.dtype == jnp.float32

    # Plain-JAX f32 reference of the surviving output path (two un-composed
    # matmuls over all tokens, then CLS slice + position embedding).  Tolerance
    # covers the bf16 operand/output quantization (~|out| * 2^-9 ≈ 7e-3 here).
    flat_ids = x.reshape(N * PAR_LEN, SEQ_LEN)
    last_hidden = params["bert_tok_table"][flat_ids] * mask.reshape(
        N * PAR_LEN, SEQ_LEN, 1).astype(jnp.float32)
    wl = last_hidden @ params["fc1_w"] + params["fc1_b"]
    wl = wl @ params["fc2_w"] + params["fc2_b"]
    wl = wl.reshape(N, PAR_LEN, SEQ_LEN, EMBED_SIZE)
    ref = wl[:, :, 0, :] + params["position_embedding"][:PAR_LEN][None]
    err = float(jnp.max(jnp.abs(out - ref)))
    assert err < 2e-2, f"max abs err {err}"

    print("KERNEL_OK")
</pallas_src>

<mosaic_0001>
module attributes {stable_mosaic.version = 11 : i64} {
  func.func @matmul_posadd_kernel(%arg0: i32, %arg1: memref<32x768xbf16, #tpu.memory_space<vmem>>, %arg2: memref<768x128xbf16, #tpu.memory_space<vmem>>, %arg3: memref<16x128xf32, #tpu.memory_space<vmem>>, %arg4: memref<32x1xi32, #tpu.memory_space<vmem>>, %arg5: memref<32x128xbf16, #tpu.memory_space<vmem>>) attributes {dimension_semantics = [#tpu.dimension_semantics<parallel>], iteration_bounds = array<i64: 2>, scalar_prefetch = 0 : i64, scratch_operands = 0 : i64, tpu.core_type = #tpu.core_type<tc>, window_params = [{transform_indices = @transform_0, window_bounds = array<i64: 32, 768>}, {pipeline_mode = #tpu.pipeline_mode<synchronous>, transform_indices = @transform_1, window_bounds = array<i64: 768, 128>}, {pipeline_mode = #tpu.pipeline_mode<synchronous>, transform_indices = @transform_2, window_bounds = array<i64: 16, 128>}, {transform_indices = @transform_3, window_bounds = array<i64: 32, 1>}, {transform_indices = @transform_4, window_bounds = array<i64: 32, 128>}]} {
    %c0 = arith.constant 0 : index
    %c0_0 = arith.constant 0 : index
    %0 = vector.load %arg1[%c0, %c0_0] : memref<32x768xbf16, #tpu.memory_space<vmem>>, vector<32x768xbf16>
    %c0_1 = arith.constant 0 : index
    %c0_2 = arith.constant 0 : index
    %1 = vector.load %arg2[%c0_1, %c0_2] : memref<768x128xbf16, #tpu.memory_space<vmem>>, vector<768x128xbf16>
    %cst = arith.constant dense<0.000000e+00> : vector<32x128xf32>
    %2 = tpu.matmul %0, %1, %cst {dimension_numbers = #tpu.dot_dimension_numbers<[1], [0], [0], [1], [0, 0, 1, 1], [], []>} : vector<32x768xbf16>, vector<768x128xbf16>, vector<32x128xf32> -> vector<32x128xf32>
    %3 = tpu.iota {dimensions = array<i32: 1>} : vector<32x16xi32>
    %c0_3 = arith.constant 0 : index
    %c0_4 = arith.constant 0 : index
    %4 = vector.load %arg4[%c0_3, %c0_4] : memref<32x1xi32, #tpu.memory_space<vmem>>, vector<32x1xi32>
    %5 = vector.broadcast %4 : vector<32x1xi32> to vector<32x16xi32>
    %6 = arith.cmpi eq, %5, %3 : vector<32x16xi32>
    %7 = arith.extui %6 : vector<32x16xi1> to vector<32x16xi32>
    %8 = arith.sitofp %7 : vector<32x16xi32> to vector<32x16xf32>
    %c0_5 = arith.constant 0 : index
    %c0_6 = arith.constant 0 : index
    %9 = vector.load %arg3[%c0_5, %c0_6] : memref<16x128xf32, #tpu.memory_space<vmem>>, vector<16x128xf32>
    %cst_7 = arith.constant dense<0.000000e+00> : vector<32x128xf32>
    %10 = tpu.matmul %8, %9, %cst_7 {dimension_numbers = #tpu.dot_dimension_numbers<[1], [0], [0], [1], [0, 0, 1, 1], [], []>} : vector<32x16xf32>, vector<16x128xf32>, vector<32x128xf32> -> vector<32x128xf32>
    %11 = arith.addf %2, %10 : vector<32x128xf32>
    %12 = arith.truncf %11 : vector<32x128xf32> to vector<32x128xbf16>
    %c0_8 = arith.constant 0 : index
    %c0_9 = arith.constant 0 : index
    %13 = vector.load %arg5[%c0_8, %c0_9] : memref<32x128xbf16, #tpu.memory_space<vmem>>, vector<32x128xbf16>
    tpu.vector_store %arg5[%c0_8, %c0_9], %12 {strides = array<i32>} : memref<32x128xbf16, #tpu.memory_space<vmem>>, vector<32x128xbf16>,
    return
  }
  func.func @transform_0(%arg0: i32) -> (i32, i32) {
    %c0_i32 = arith.constant 0 : i32
    %c0_i32_0 = arith.constant 0 : i32
    return %arg0, %c0_i32 : i32, i32
  }
  func.func @transform_1(%arg0: i32) -> (i32, i32) {
    %c0_i32 = arith.constant 0 : i32
    %c0_i32_0 = arith.constant 0 : i32
    %c0_i32_1 = arith.constant 0 : i32
    return %c0_i32, %c0_i32_0 : i32, i32
  }
  func.func @transform_2(%arg0: i32) -> (i32, i32) {
    %c0_i32 = arith.constant 0 : i32
    %c0_i32_0 = arith.constant 0 : i32
    %c0_i32_1 = arith.constant 0 : i32
    return %c0_i32, %c0_i32_0 : i32, i32
  }
  func.func @transform_3(%arg0: i32) -> (i32, i32) {
    %c0_i32 = arith.constant 0 : i32
    %c0_i32_0 = arith.constant 0 : i32
    return %arg0, %c0_i32 : i32, i32
  }
  func.func @transform_4(%arg0: i32) -> (i32, i32) {
    %c0_i32 = arith.constant 0 : i32
    %c0_i32_0 = arith.constant 0 : i32
    return %arg0, %c0_i32 : i32, i32
  }
}

</mosaic_0001>

<bundles_post_ra>
// kernel: sentence_encoder_forward.1
= control target key start
LH: loop header
LB: loop body
LE: loop exit
PB: predicated region body
PF: predicated region fallthrough
CT: control target
= control target key end

     0   :  { %s1769_s15 = smov 0   ;;  %s1771_s16 = smov 0   ;;  %s2102_s0 = inlined_call_operand.vmem [shape: bf16[48,768], index: 0, kind: input, shape index: {}]   ;;  %s2103_s1 = inlined_call_operand.vmem [shape: bf16[768,128], index: 1, kind: input, shape index: {}]   ;;  %s2104_s2 = inlined_call_operand.vmem [shape: f32[16,128], index: 2, kind: input, shape index: {}]   ;;  %s2105_s3 = inlined_call_operand.vmem [shape: s32[48,1], index: 3, kind: input, shape index: {}]   ;;  %s2106_s4 = inlined_call_operand.vmem [shape: bf16[48,128], index: 4, kind: output, shape index: {}]  }
   0x1   :  { %s1773_s17 = smov 0  }
   0x2 LB: > { %s1782_s18 = sadd.s32 4294967295, %s1708_s17   ;;  %s1784_s19 = sadd.s32 1, %s1708_s17   ;;  %s1708_s17 = sphi %s1773_s17, %s2113_s17   ;;  %s1704_s16 = sphi %s1771_s16, %s2112_s16   ;;  %s1700_s15 = sphi %s1769_s15, %s2111_s15  }
   0x3   : > { %s112_s20 = ssub.s32 %s1708_s17, %s1784_s19  ;;  %s115_s21 = sadd.s32 1, %s1704_s16 }
   0x4   : > { %p113_p0 = scmp.eq.s32.totalorder %s112_s20, 0  ;;  %p125_p1 = scmp.ne.s32.totalorder %s1704_s16, %s1700_s15 }
   0x5   : > { %p126_p2 = scmp.eq.s32.totalorder %s1782_s18, 1  ;;  %p1266_p3 = scmp.ge.s32.totalorder %s1708_s17, 1 }
   0x6   : > { %s1792_s22 = scalar_select %p113_p0, %s1704_s16, %s115_s21  }
   0x7   : > { %p1794_p4 = por %p126_p2, %p125_p1  ;;  %p193_p5 = scmp.lt.s32.totalorder %s1708_s17, 3 }
   0x9   : > { %p194_p6 = pnand %p1266_p3, %p193_p5 }
   0xa   : > { %s1799_s24 = sshll.u32 (!%p194_p6), %s1782_s18, 2 }
   0xb   : > { %197 = sbr.rel (%p194_p6) target bundleno = 464 (0x1d0), region = 36  ;;  %p239_p7 = scmp.lt.s32.totalorder (!%p194_p6), %s1799_s24, 5 }
  0x10   : > { %v1742_v0 = vmov 0   ;;  %v1588_v1 = vld [vmem:[%s2103_s1 + $0x78] sm:$0xff]   ;;  %s240_s29 = scalar_select %p239_p7, %s1799_s24, 5  ;;  %v1590_v3 = vld [vmem:[%s2103_s1 + $0x70] sm:$0xff]   ;;  %v1592_v5 = vld [vmem:[%s2103_s1 + $0x68] sm:$0xff]   ;;  %v378_v46 = vlaneseq  ;;  %vm410_vm0 = vcmask 130048  }
  0x11   : > { %1586 = vset.pattern.permute.xlu0 %v1742_v0  ;;  %1587 = vset.pattern.permute.xlu1 %v1742_v0  ;;  %v1589_v2 = vld [vmem:[%s2103_s1 + $0x38] sm:$0xff]   ;;  %v1591_v4 = vld [vmem:[%s2103_s1 + $0x30] sm:$0xff]   ;;  %v1593_v9 = vld [vmem:[%s2103_s1 + $0x28] sm:$0xff]   ;;  %v1743_v50 = vmov 0.0   ;;  %s1365_s26 = sshll.u32 (%p1794_p4), %s1782_s18, 4 }
  0x12   : > { %1385 = vmatprep.subr.bf16.mxu1 %v1588_v1  ;;  %s1271_s6 = sshll.u32 %s240_s29, 3  ;;  %v1594_v11 = vld [vmem:[%s2103_s1 + $0x60] sm:$0xff]   ;;  %s1495_s25 = smul.u32 24, %s240_s29  ;;  %v1596_v13 = vld [vmem:[%s2103_s1 + $0x58] sm:$0xff]   ;;  %v1598_v15 = vld [vmem:[%s2103_s1 + $0x50] sm:$0xff]   ;;  %v379_v47 = vand.u32 127, %v378_v46 }
  0x13   : > { %1386 = vmatpush3.bf16.msra.mxu1 %v1589_v2  ;;  %s258_s13 = scalar_lea.vmem %s2105_s3, %s1271_s6  ;;  %v1595_v12 = vld [vmem:[%s2103_s1 + $0x20] sm:$0xff]   ;;  %v1597_v14 = vld [vmem:[%s2103_s1 + $0x18] sm:$0xff]   ;;  %v409_v17 = vld [vmem:[%s2104_s2 + $0x8] sm:$0xff]  ;;  %s2053_s30 = scalar_lea.vmem (%p1794_p4), %s2106_s4, %s1365_s26  }
  0x14   : > { %1387 = vmatprep.subr.bf16.mxu1 %v1590_v3  ;;  %v380_v6 = vld [vmem:[%s258_s13] sm:$0xff]  ;;  %v382_v7 = vld [vmem:[%s258_s13 + $0x10] sm:$0xff]  ;;  %v381_v8 = vld [vmem:[%s258_s13 + $0x8] sm:$0xff]  ;;  %s1836_s7 = scalar_lea.vmem %s2102_s0, %s1495_s25  ;;  %1469 = vmatprep.subr.mxu0 %v409_v17 }
  0x15   : > { %385 = vperm.xlu0 %1586, %v380_v6   ;;  %391 = vperm.xlu1 %1587, %v382_v7   ;;  %v383_v10 = vld [vmem:[%s258_s13 + $0x18] sm:$0xff]  ;;  %v408_v18 = vld [vmem:[%s2104_s2] sm:$0xff]  ;;  %v1599_v20 = vld [vmem:[%s2103_s1 + $0x10] sm:$0xff]  }
  0x16   : > { %v1606_v16 = vld [vmem:[%s1836_s7 + $0x4] ss:$24 sps:$4 sm:$0xff]   ;;  %1470 = vmatpush3.msra.mxu0 %v409_v17  ;;  %v1600_v21 = vld [vmem:[%s2103_s1 + $0x48] sm:$0xff]   ;;  %v1604_v26 = vld [vmem:[%s1836_s7] ss:$24 sps:$4 sm:$0xff]  }
  0x17   : > { %1388 = vmatpush3.bf16.msra.mxu1 %v1591_v4  ;;  %888 = vmatprep.mubr.bf16.mxu1 %v1606_v16  ;;  %v1607_v19 = vld [vmem:[%s2103_s1 + $0xf8] sm:$0xff]   ;;  %v1601_v22 = vld [vmem:[%s2103_s1 + $0x8] sm:$0xff]   ;;  %v1602_v23 = vld [vmem:[%s2103_s1 + $0x40] sm:$0xff]  }
  0x18   : > { %1389 = vmatprep.subr.bf16.mxu1 %v1592_v5  ;;  %1471 = vmatprep.subr.mxu0 %v408_v18  ;;  %v1603_v24 = vld [vmem:[%s2103_s1] sm:$0xff]   ;;  %v1872_v25 = vld [vmem:[%s2103_s1 + $0x178] sm:$0xff]   ;;  %v1619_v28 = vld [vmem:[%s1836_s7 + $0x34] ss:$24 sps:$4 sm:$0xff]  }
  0x19   : > { %388 = vperm.xlu0 %1586, %v381_v8   ;;  %394 = vperm.xlu1 %1587, %v383_v10   ;;  %v1878_v27 = vld [vmem:[%s2103_s1 + $0x138] sm:$0xff]   ;;  %v1885_v29 = vld [vmem:[%s2103_s1 + $0x170] sm:$0xff]   ;;  %v1897_v31 = vld [vmem:[%s2103_s1 + $0x168] sm:$0xff]  }
  0x1a   : > { %1472 = vmatpush3.msra.mxu0 %v408_v18  ;;  %v1891_v30 = vld [vmem:[%s2103_s1 + $0x130] sm:$0xff]   ;;  %v1904_v33 = vld [vmem:[%s2103_s1 + $0x128] sm:$0xff]   ;;  %v1910_v34 = vld [vmem:[%s2103_s1 + $0x160] sm:$0xff]  }
  0x1b   : > { %1390 = vmatpush3.bf16.msra.mxu1 %v1593_v9  ;;  %1413 = vmatprep.subr.bf16.mxu0 %v1607_v19  ;;  %v1622_v32 = vld [vmem:[%s1836_s7 + $0x30] ss:$24 sps:$4 sm:$0xff]   ;;  %v1916_v35 = vld [vmem:[%s2103_s1 + $0x120] sm:$0xff]   ;;  %v1922_v36 = vld [vmem:[%s2103_s1 + $0x158] sm:$0xff]  }
  0x1c   : > { %1391 = vmatprep.subr.bf16.mxu1 %v1594_v11  ;;  %v1928_v37 = vld [vmem:[%s2103_s1 + $0x118] sm:$0xff]   ;;  %v1934_v38 = vld [vmem:[%s2103_s1 + $0x150] sm:$0xff]   ;;  %v1946_v40 = vld [vmem:[%s2103_s1 + $0x148] sm:$0xff]  }
  0x1d   : > { %v1940_v39 = vld [vmem:[%s2103_s1 + $0x110] sm:$0xff]   ;;  %v1650_v41 = vld [vmem:[%s1836_s7 + $0x44] ss:$24 sps:$4 sm:$0xff]   ;;  %v1953_v42 = vld [vmem:[%s2103_s1 + $0x108] sm:$0xff]  }
  0x1e   : > { %v1959_v43 = vld [vmem:[%s2103_s1 + $0x140] sm:$0xff]   ;;  %v1608_v53 = vld [vmem:[%s2103_s1 + $0xb8] sm:$0xff]   ;;  %v1609_v55 = vld [vmem:[%s2103_s1 + $0xf0] sm:$0xff]  }
  0x1f   : > { %1392 = vmatpush3.bf16.msra.mxu1 %v1595_v12  ;;  %v1965_v44 = vld [vmem:[%s2103_s1 + $0x100] sm:$0xff]   ;;  %v1610_v58 = vld [vmem:[%s2103_s1 + $0xb0] sm:$0xff]   ;;  %v1611_v61 = vld [vmem:[%s2103_s1 + $0xe8] sm:$0xff]  }
  0x20   : > { %1393 = vmatprep.subr.bf16.mxu1 %v1596_v13  ;;  %v1648_v45 = vld [vmem:[%s1836_s7 + $0x40] ss:$24 sps:$4 sm:$0xff]   ;;  %v1639_v60 = vld [vmem:[%s1836_s7 + $0xc] ss:$24 sps:$4 sm:$0xff]   ;;  %v1626_v3 = vld [vmem:[%s2103_s1 + $0xd0] sm:$0xff]  }
  0x21   : > { %v1612_v62 = vld [vmem:[%s2103_s1 + $0xa8] sm:$0xff]   ;;  %v1615_v63 = vld [vmem:[%s2103_s1 + $0xe0] sm:$0xff]   ;;  %v1621_v1 = vld [vmem:[%s2103_s1 + $0xd8] sm:$0xff]  }
  0x22   : > { %v1616_v0 = vld [vmem:[%s2103_s1 + $0xa0] sm:$0xff]   ;;  %v1623_v2 = vld [vmem:[%s2103_s1 + $0x98] sm:$0xff]   ;;  %v1627_v4 = vld [vmem:[%s2103_s1 + $0x90] sm:$0xff]  }
  0x23   : > { %1394 = vmatpush3.bf16.msra.mxu1 %v1597_v14  ;;  %v1630_v5 = vld [vmem:[%s2103_s1 + $0xc8] sm:$0xff]   ;;  %v1634_v7 = vld [vmem:[%s2103_s1 + $0xc0] sm:$0xff]   ;;  %v1644_v10 = vld [vmem:[%s1836_s7 + $0x3c] ss:$24 sps:$4 sm:$0xff]  }
  0x24   : > { %1395 = vmatprep.subr.bf16.mxu1 %v1598_v15  ;;  %v1631_v6 = vld [vmem:[%s2103_s1 + $0x88] sm:$0xff]   ;;  %v1635_v8 = vld [vmem:[%s2103_s1 + $0x80] sm:$0xff]   ;;  %v1647_v11 = vld [vmem:[%s1836_s7 + $0x38] ss:$24 sps:$4 sm:$0xff]  }
  0x25   : > { %v1637_v9 = vld [vmem:[%s1836_s7 + $0x8] ss:$24 sps:$4 sm:$0xff]   ;;  %v1653_v12 = vld [vmem:[%s1836_s7 + $0x14] ss:$24 sps:$4 sm:$0xff]  }
  0x26   : > { %v1651_v13 = vld [vmem:[%s1836_s7 + $0x10] ss:$24 sps:$4 sm:$0xff]   ;;  %s230_s7 = sand.u32 1, %s1700_s15   ;;  %s1031_s15 = ssub.s32 (%p1794_p4), 6, %s1799_s24 }
  0x27   : > { %1396 = vmatpush3.bf16.msra.mxu1 %v1599_v20  ;;  %s1267_s21 = sshll.u32 %s230_s7, 4  ;;  %p1032_p8 = scmp.lt.s32.totalorder (%p1794_p4), %s1031_s15, 4 }
  0x28   : > { %1397 = vmatprep.subr.bf16.mxu1 %v1600_v21  ;;  %s2042_s25 = scalar_lea.vmem [#allocation2], %s1267_s21  }
  0x2b   : > { %1398 = vmatpush3.bf16.msra.mxu1 %v1601_v22 }
  0x2c   : > { %1399 = vmatprep.subr.bf16.mxu1 %v1602_v23 }
  0x2f   : > { %1400 = vmatpush3.bf16.msra.mxu1 %v1603_v24 }
  0x30   : > { %1479 = vmatprep.subr.bf16.mxu1 %v1872_v25 }
  0x32   : > { %889 = vmatmul.mubr.bf16.vlgmr.msra.gmra.mxu1 %v1604_v26 }
  0x33   : > { %1487 = vmatpush3.bf16.msra.mxu1 %v1878_v27  ;;  %896 = vmatprep.mubr.bf16.mxu1 %v1619_v28 }
  0x34   : > { %1480 = vmatprep.subr.bf16.mxu1 %v1885_v29 }
  0x37   : > { %1488 = vmatpush3.bf16.msra.mxu1 %v1891_v30 }
  0x38   : > { %1481 = vmatprep.subr.bf16.mxu1 %v1897_v31 }
  0x3a   : > { %897 = vmatmul.mubr.bf16.gmra.mxu1 %v1622_v32 }
  0x3b   : > { %1489 = vmatpush3.bf16.msra.mxu1 %v1904_v33  ;;  %994 = vmatprep.mubr.bf16.mxu1 %v1650_v41 }
  0x3c   : > { %1482 = vmatprep.subr.bf16.mxu1 %v1910_v34 }
  0x3f   : > { %1490 = vmatpush3.bf16.msra.mxu1 %v1916_v35 }
  0x40   : > { %1483 = vmatprep.subr.bf16.mxu1 %v1922_v36 }
  0x43   : > { %1491 = vmatpush3.bf16.msra.mxu1 %v1928_v37 }
  0x44   : > { %1484 = vmatprep.subr.bf16.mxu1 %v1934_v38 }
  0x47   : > { %1492 = vmatpush3.bf16.msra.mxu1 %v1940_v39 }
  0x48   : > { %1485 = vmatprep.subr.bf16.mxu1 %v1946_v40 }
  0x4b   : > { %1493 = vmatpush3.bf16.msra.mxu1 %v1953_v42 }
  0x4c   : > { %1486 = vmatprep.subr.bf16.mxu1 %v1959_v43 }
  0x4f   : > { %1494 = vmatpush3.bf16.msra.mxu1 %v1965_v44 }
  0x52   : > { %995 = vmatmul.mubr.bf16.vlgmr.msra.gmra.mxu1 %v1648_v45 }
  0x90   : > { %v386_v48 = vpop.permute.xlu0 %385  ;;  %v392_v49 = vpop.permute.xlu1 %391 }
  0x91   : > { %vm396_vm1 = vcmp.eq.s32.totalorder %v386_v48, %v379_v47  ;;  %vm398_vm2 = vcmp.eq.s32.totalorder %v392_v49, %v379_v47 }
  0x92   : > { %v1272_v51 = vsel %vm396_vm1, 1.0, %v1743_v50  ;;  %v1274_v56 = vsel %vm398_vm2, 1.0, %v1743_v50 }
  0x93   : > { %1473 = vmatprep.mubr.msk.f32.mxu0 %vm410_vm0, %v1272_v51 }
  0x94   : > { %v389_v52 = vpop.permute.xlu0 %388  ;;  %v395_v54 = vpop.permute.xlu1 %394 }
  0x95   : > { %vm397_vm3 = vcmp.eq.s32.totalorder %v389_v52, %v379_v47  ;;  %vm399_vm4 = vcmp.eq.s32.totalorder %v395_v54, %v379_v47 }
  0x96   : > { %v1273_v57 = vsel %vm397_vm3, 1.0, %v1743_v50  ;;  %v1275_v59 = vsel %vm399_vm4, 1.0, %v1743_v50 }
  0x97   : > { %1474 = vmatmul.mubr.msk.f32.vlgmr.msra.gmra.mxu0 %vm410_vm0, %v1273_v57 }
  0x98   : > { %1414 = vmatpush3.bf16.msra.mxu0 %v1608_v53  ;;  %1476 = vmatprep.mubr.msk.f32.mxu0 %vm410_vm0, %v1274_v56 }
  0x99   : > { %1415 = vmatprep.subr.bf16.mxu0 %v1609_v55 }
  0x9b   : > { %1477 = vmatmul.mubr.msk.f32.gmra.mxu0 %vm410_vm0, %v1275_v59 }
  0x9c   : > { %1416 = vmatpush3.bf16.msra.mxu0 %v1610_v58  ;;  %937 = vmatprep.mubr.bf16.mxu0 %v1639_v60 }
  0x9d   : > { %1417 = vmatprep.subr.bf16.mxu0 %v1611_v61 }
  0xa0   : > { %1418 = vmatpush3.bf16.msra.mxu0 %v1612_v62 }
  0xa1   : > { %1419 = vmatprep.subr.bf16.mxu0 %v1615_v63 }
  0xa4   : > { %1420 = vmatpush3.bf16.msra.mxu0 %v1616_v0 }
  0xa5   : > { %1421 = vmatprep.subr.bf16.mxu0 %v1621_v1 }
  0xa8   : > { %1422 = vmatpush3.bf16.msra.mxu0 %v1623_v2 }
  0xa9   : > { %1423 = vmatprep.subr.bf16.mxu0 %v1626_v3 }
  0xac   : > { %1424 = vmatpush3.bf16.msra.mxu0 %v1627_v4 }
  0xad   : > { %1425 = vmatprep.subr.bf16.mxu0 %v1630_v5 }
  0xb0   : > { %1426 = vmatpush3.bf16.msra.mxu0 %v1631_v6 }
  0xb1   : > { %1427 = vmatprep.subr.bf16.mxu0 %v1634_v7 }
  0xb4   : > { %1428 = vmatpush3.bf16.msra.mxu0 %v1635_v8 }
  0xb5   : > { %1441 = vmatprep.subr.bf16.mxu0 %v1872_v25 }
  0xb7   : > { %938 = vmatmul.mubr.bf16.vlgmr.msra.gmra.mxu0 %v1637_v9 }
  0xb8   : > { %1442 = vmatpush3.bf16.msra.mxu0 %v1878_v27  ;;  %945 = vmatprep.mubr.bf16.mxu0 %v1644_v10 }
  0xb9   : > { %1443 = vmatprep.subr.bf16.mxu0 %v1885_v29 }
  0xbc   : > { %1444 = vmatpush3.bf16.msra.mxu0 %v1891_v30 }
  0xbd   : > { %1445 = vmatprep.subr.bf16.mxu0 %v1897_v31 }
  0xbf   : > { %946 = vmatmul.mubr.bf16.gmra.mxu0 %v1647_v11 }
  0xc0   : > { %1446 = vmatpush3.bf16.msra.mxu0 %v1904_v33  ;;  %986 = vmatprep.mubr.bf16.mxu0 %v1653_v12 }
  0xc1   : > { %1447 = vmatprep.subr.bf16.mxu0 %v1910_v34 }
  0xc4   : > { %1448 = vmatpush3.bf16.msra.mxu0 %v1916_v35 }
  0xc5   : > { %1449 = vmatprep.subr.bf16.mxu0 %v1922_v36 }
  0xc8   : > { %1450 = vmatpush3.bf16.msra.mxu0 %v1928_v37 }
  0xc9   : > { %1451 = vmatprep.subr.bf16.mxu0 %v1934_v38 }
  0xcc   : > { %1452 = vmatpush3.bf16.msra.mxu0 %v1940_v39 }
  0xcd   : > { %1453 = vmatprep.subr.bf16.mxu0 %v1946_v40 }
  0xd0   : > { %1454 = vmatpush3.bf16.msra.mxu0 %v1953_v42 }
  0xd1   : > { %1455 = vmatprep.subr.bf16.mxu0 %v1959_v43 }
  0xd4   : > { %1456 = vmatpush3.bf16.msra.mxu0 %v1965_v44 }
  0xd7   : > { %987 = vmatmul.mubr.bf16.vlgmr.msra.gmra.mxu0 %v1651_v13 }
  0xf2   : > { %v1401_v14 = vpop.f32.mrf.mxu1 }
  0xf4   : > { %v1402_v15 = vpop.f32.mrf.mxu1 }
  0xf5   : > { %v1403_v52 = vadd.f32 %v1402_v15, %v1401_v14 }
  0xf6   : > { %v1404_v16 = vpop.f32.mrf.mxu1 }
  0xf8   : > { %v1405_v17 = vpop.f32.mrf.mxu1 }
  0xf9   : > { %v1406_v53 = vadd.f32 %v1405_v17, %v1404_v16 }
  0xfa   : > { %v1407_v18 = vpop.f32.mrf.mxu1 }
  0xfc   : > { %v1408_v20 = vpop.f32.mrf.mxu1 }
  0xfd   : > { %v1409_v34 = vadd.f32 %v1408_v20, %v1407_v18 }
  0xfe   : > { %v1410_v22 = vpop.f32.mrf.mxu1 }
 0x100   : > { %v1411_v24 = vpop.f32.mrf.mxu1 }
 0x101   : > { %v1412_v36 = vadd.f32 %v1411_v24, %v1410_v22 }
 0x112   : > { %v1463_v27 = vpop.f32.mrf.mxu1 }
 0x114   : > { %v1464_v30 = vpop.f32.mrf.mxu1 }
 0x115   : > { %v1465_v41 = vadd.f32 %v1464_v30, %v1463_v27 }
 0x116   : > { %v1466_v33 = vpop.f32.mrf.mxu1 }
 0x118   : > { %v1467_v39 = vpop.f32.mrf.mxu1 }
 0x119   : > { %v1468_v46 = vadd.f32 %v1467_v39, %v1466_v33 }
 0x157   : > { %v1475_v19 = vpop.f32.mrf.mxu0 }
 0x158   : > { %v894_v58 = vadd.f32 %v1475_v19, %v1406_v53 }
 0x159   : > { %v489_v21 = vpop.f32.mrf.mxu0 }
 0x15a   : > { %v891_v59 = vadd.f32 %v1403_v52, %v489_v21 }
 0x15b   : > { %v1478_v23 = vpop.f32.mrf.mxu0 }
 0x15c   : > { %v902_v43 = vadd.f32 %v1478_v23, %v1412_v36 }
 0x15d   : > { %v499_v25 = vpop.f32.mrf.mxu0 }
 0x15e   : > { %v899_v40 = vadd.f32 %v1409_v34, %v499_v25 }
 0x177   : > { %v1429_v26 = vpop.f32.mrf.mxu0 }
 0x179   : > { %v1430_v28 = vpop.f32.mrf.mxu0 }
 0x17a   : > { %v1431_v55 = vadd.f32 %v1430_v28, %v1429_v26 }
 0x17b   : > { %v1432_v29 = vpop.f32.mrf.mxu0 }
 0x17c   : > { %v940_v62 = vadd.f32 %v1431_v55, %v891_v59 }
 0x17d   : > { %v1433_v31 = vpop.f32.mrf.mxu0 }
 0x17e   : > { %v1434_v56 = vadd.f32 %v1433_v31, %v1432_v29 }
 0x17f   : > { %v1435_v32 = vpop.f32.mrf.mxu0 }
 0x180   : > { %v943_v63 = vadd.f32 %v1434_v56, %v894_v58 }
 0x181   : > { %v1436_v35 = vpop.f32.mrf.mxu0 }
 0x182   : > { %v1437_v37 = vadd.f32 %v1436_v35, %v1435_v32 }
 0x183   : > { %v1438_v38 = vpop.f32.mrf.mxu0 }
 0x184   : > { %v948_v44 = vadd.f32 %v1437_v37, %v899_v40 }
 0x185   : > { %v1439_v42 = vpop.f32.mrf.mxu0 }
 0x186   : > { %v1440_v45 = vadd.f32 %v1439_v42, %v1438_v38  ;;  %v997_v48 = vadd.f32 %v1465_v41, %v948_v44 }
 0x188   : > { %v951_v47 = vadd.f32 %v1440_v45, %v902_v43 }
 0x18a   : > { %v1000_v49 = vadd.f32 %v1468_v46, %v951_v47 }
 0x18c   : > { %v1376_v50 = vpack.c.bf16 %v1000_v49, %v997_v48 }
 0x18e   : > { %1378 = vst [vmem:[%s2042_s25 + $0x8] sm:$0xff] %v1376_v50  }
 0x197   : > { %v1457_v51 = vpop.f32.mrf.mxu0 }
 0x199   : > { %v1458_v54 = vpop.f32.mrf.mxu0 }
 0x19a   : > { %v1459_v60 = vadd.f32 %v1458_v54, %v1457_v51 }
 0x19b   : > { %v1460_v57 = vpop.f32.mrf.mxu0 }
 0x19c   : > { %v989_v1 = vadd.f32 %v1459_v60, %v940_v62 }
 0x19d   : > { %v1461_v61 = vpop.f32.mrf.mxu0 }
 0x19e   : > { %v1462_v0 = vadd.f32 %v1461_v61, %v1460_v57 }
 0x1a0   : > { %v992_v2 = vadd.f32 %v1462_v0, %v943_v63  ;;  %1029 = sbr.rel (!%p1794_p4) target bundleno = 464 (0x1d0), region = 40 }
 0x1a2   : > { %v1371_v3 = vpack.c.bf16 %v992_v2, %v989_v1 }
 0x1a4   : > { %1372 = vst [vmem:[%s2042_s25] sm:$0xff] %v1371_v3  }
 0x1a5   : > { %s2115_s15 = smov (!%p1032_p8, %s1031_s15), 4 }
 0x1a6   : > { %s1346_s5 = sshll.u32 %s2115_s15, 6 }
 0x1a7   : > { %p1349_p9 = scmp.eq.s32.totalorder %s1346_s5, 0 }
 0x1a8   : > { %s2059_s6 = sshrl.u32 (!%p1349_p9), %s2115_s15, 2 }
 0x1a9   : > { %1040 = sbr.rel (%p1349_p9) target bundleno = 464 (0x1d0), region = 44  ;;  %p1350_p10 = scmp.le.s32.totalorder (!%p1349_p9), %s2059_s6, 0 }
 0x1ae   : > { %1213 = sbr.rel (%p1350_p10) target bundleno = 447 (0x1bf), region = 119  ;;  %s2108_s18 = smov (!%p1350_p10), %s2053_s30 }
 0x1af   : > { %s2109_s23 = smov (!%p1350_p10), %s2042_s25  ;;  %s2068_s24 = smov (!%p1350_p10), 0  }
 0x1b0   : > { %s1722_s29 = smov (!%p1350_p10), 0  }
 0x1b3 LB: >> { %v1057_v4 = vld [vmem:[%s1716_s23] sm:$0xf]  ;;  %v1059_v5 = vld [vmem:[%s1716_s23 + $0x4] sm:$0xf]  ;;  %v1061_v6 = vld [vmem:[%s1716_s23 + $0x8] sm:$0xf]  ;;  %s1724_s29 = sphi %s1722_s29, %s1051_s29   ;;  %s1720_s24 = sphi %s2068_s24, %s2110_s24   ;;  %s1716_s23 = sphi %s2109_s23, %s1070_s23   ;;  %s1712_s18 = sphi %s2108_s18, %s1071_s18  }
 0x1b4   : >> { %1058 = vst [vmem:[%s1712_s18] sm:$0xf] %v1057_v4  ;;  %1060 = vst [vmem:[%s1712_s18 + $0x4] sm:$0xf] %v1059_v5  ;;  %v1063_v7 = vld [vmem:[%s1716_s23 + $0xc] sm:$0xf]  ;;  %s1065_s8 = sadd.s32 1, %s1720_s24 }
 0x1b5   : >> { %1062 = vst [vmem:[%s1712_s18 + $0x8] sm:$0xf] %v1061_v6  ;;  %1064 = vst [vmem:[%s1712_s18 + $0xc] sm:$0xf] %v1063_v7  ;;  %p1066_p11 = scmp.ge.s32.totalorder %s1065_s8, %s2059_s6  ;;  %s1051_s29 = sadd.s32 1, %s1724_s29  }
 0x1b6   : >> { %p1050_p12 = scmp.ge.s32.totalorder %s1051_s29, %s2059_s6 }
 0x1b7   : >> { %s2117_s8 = smov (%p1066_p11, %s1065_s8), 0 }
 0x1b8   : >> { %s1351_s9 = sshll.u32 %s2117_s8, 4  ;;  %s2110_s24 = smov %s2117_s8 }
 0x1b9   : >> { %s1070_s23 = scalar_lea.vmem %s2042_s25, %s1351_s9 [#allocation2]   ;;  %s1071_s18 = scalar_lea.vmem %s2053_s30, %s1351_s9  }
 0x1ba   : > { %1053 = sbr.rel (!%p1050_p12) target bundleno = 435 (0x1b3), region = 125 }
 0x1bf PF: > { %s2084_s10 = sand.u32 3, %s2115_s15   ;;  %s1366_s11 = sshll.u32 %s2059_s6, 4 }
 0x1c0   : > { %s1076_s12 = scalar_lea.vmem %s2042_s25, %s1366_s11 [#allocation2]   ;;  %s1078_s13 = scalar_lea.vmem %s2053_s30, %s1366_s11  }
 0x1c1   : > { %p1356_p13 = scmp.le.s32.totalorder %s2084_s10, 0 }
 0x1c2   : > { %s1726_s14 = smov (!%p1356_p13), %s1078_s13   ;;  %s1730_s17 = smov (!%p1356_p13), %s1076_s12  }
 0x1c3   : > { %1227 = sbr.rel (%p1356_p13) target bundleno = 464 (0x1d0), region = 130  ;;  %s1734_s20 = smov (!%p1356_p13), 0  }
 0x1c4   : > { %s1738_s7 = smov (!%p1356_p13), 0  }
 0x1c8 LB: >> { %v1088_v8 = vld [vmem:[%s1732_s17] sm:$0xf]  ;;  %s1090_s21 = sadd.s32 1, %s1736_s20  ;;  %s1082_s7 = sadd.s32 1, %s1740_s7   ;;  %s1740_s7 = sphi %s1738_s7, %s1082_s7   ;;  %s1736_s20 = sphi %s1734_s20, %s1735_s20   ;;  %s1732_s17 = sphi %s1730_s17, %s1095_s17   ;;  %s1728_s14 = sphi %s1726_s14, %s1096_s14  }
 0x1c9   : >> { %1089 = vst [vmem:[%s1728_s14] sm:$0xf] %v1088_v8  ;;  %p1091_p0 = scmp.ge.s32.totalorder %s1090_s21, %s2084_s10  ;;  %p1081_p1 = scmp.ge.s32.totalorder %s1082_s7, %s2084_s10 }
 0x1cb   : >> { %s2119_s21 = smov (%p1091_p0, %s1090_s21), 0  ;;  %1084 = sbr.rel (!%p1081_p1) target bundleno = 456 (0x1c8), region = 136 }
 0x1cc   : >> { %s1357_s25 = sshll.u32 %s2119_s21, 2  ;;  %s1735_s20 = smov %s2119_s21  }
 0x1cd   : >> { %s1095_s17 = scalar_lea.vmem %s1076_s12, %s1357_s25 [#allocation2]   ;;  %s1096_s14 = scalar_lea.vmem %s1078_s13, %s1357_s25  }
 0x1d0 PF: > { %p11_p2 = scmp.ge.s32.totalorder %s1784_s19, 4   ;;  %s2111_s15 = smov %s1704_s16 }
 0x1d1   : > { %s2112_s16 = smov %s1792_s22  ;;  %s2113_s17 = smov %s1784_s19 }
 0x1d2   :  { %13 = sbr.rel (!%p11_p2) target bundleno = 2 (0x2), region = 147 }

</bundles_post_ra>
